<compile_context>
chip_gen: v7x
topology: tpu7x:2x2x1
jax: 0.10.0
libtpu: 0.0.40
codegen_flags: <defaults>
</compile_context>

<pallas_src>
import functools

import jax
import jax.numpy as jnp
from jax.experimental import pallas as pl
from jax.experimental.pallas import tpu as pltpu


# ---------------------------------------------------------------------------
# Kernels
# ---------------------------------------------------------------------------
def _sdpa_kernel(q_ref, k_ref, v_ref, o_ref, *, scale, k_transposed, mm_dtype):
    # q_ref: (G, Sq, D)
    # k_ref: (G, Sk, D)  or (G, D, Sk) if k_transposed
    # v_ref: (G, Sk, E)
    # o_ref: (G, Sq, E)
    q = q_ref[...]
    if scale != 1.0:
        # Apply the scale in f32 on the (small) q tile, then downcast for the
        # MXU; avoids rounding the scale into bf16 before the matmul.
        q = (q.astype(jnp.float32) * scale).astype(mm_dtype)
    else:
        q = q.astype(mm_dtype)
    k = k_ref[...].astype(mm_dtype)

    if k_transposed:
        # q (G, Sq, D) x kT (G, D, Sk) -> (G, Sq, Sk)
        dn = (((2,), (1,)), ((0,), (0,)))
    else:
        # q (G, Sq, D) x k (G, Sk, D), contracting on D -> (G, Sq, Sk)
        dn = (((2,), (2,)), ((0,), (0,)))

    s = jax.lax.dot_general(
        q, k, dimension_numbers=dn, preferred_element_type=jnp.float32
    )  # (G, Sq, Sk) float32

    # Numerically stable softmax along Sk; the 1/denom normalization is
    # deferred to the (G, Sq, E) output accumulator.
    m = jnp.max(s, axis=-1, keepdims=True)
    p = jnp.exp(s - m)
    denom = jnp.sum(p, axis=-1, keepdims=True)  # (G, Sq, 1) float32

    # out[g, q, e] = sum_k p[g, q, k] * v[g, k, e]
    acc = jax.lax.dot_general(
        p.astype(mm_dtype),
        v_ref[...].astype(mm_dtype),
        dimension_numbers=(((2,), (1,)), ((0,), (0,))),
        preferred_element_type=jnp.float32,
    )  # (G, Sq, E) float32

    # NOTE: approx reciprocal (EUP) deviates ~1e-3 relative from an exact
    # softmax normalization; acceptable for this module's tolerances.
    acc = acc * pl.reciprocal(denom, approx=True)
    o_ref[...] = acc.astype(o_ref.dtype)


# ---------------------------------------------------------------------------
# Host-side helpers
# ---------------------------------------------------------------------------
def _tpu_info():
    """Best-effort (VMEM capacity bytes, TensorCores per chip) query."""
    vmem_bytes = 64 * 1024 * 1024  # conservative default (v7x physical VMEM)
    num_tc = 1                     # v5e / v6e have a single TC per chip
    try:
        info = pltpu.get_tpu_info()
        for attr in ("vmem_capacity_bytes", "vmem_bytes", "vmem_size_bytes"):
            v = getattr(info, attr, None)
            if v:
                vmem_bytes = int(v)
                break
        for attr in ("num_tensorcores", "tensorcore_count", "num_cores",
                     "cores_per_chip"):
            v = getattr(info, attr, None)
            if v:
                num_tc = int(v)
                break
    except Exception:  # pragma: no cover - defensive; keep conservative defaults
        pass
    return vmem_bytes, num_tc


def _block_bytes(g, Sq, Sk, D, E, itemsize):
    # Double-buffered in/out blocks + f32 intermediates (scores, exp(scores),
    # accumulator) + bf16 casts; generous so we never overshoot VMEM.
    io = 2 * g * (Sq * D + Sk * D + Sk * E + Sq * E) * itemsize
    tmp = g * (2 * Sq * Sk + 2 * Sq * E) * 4
    return io + tmp


def _choose_group(BH, Sq, Sk, D, E, itemsize, vmem_budget_bytes, num_tensorcores):
    """Largest divisor G of BH whose block fits the VMEM budget.

    Bigger G amortizes per-grid-step overhead and enlarges DMAs.  On 2-TC
    chips (v7x) keep >= 2 grid steps so both cores get work; on single-TC
    chips (v5e/v6e) the grid is a serial loop, so G = BH is allowed.
    """
    best = 1
    for g in range(1, BH + 1):
        if BH % g:
            continue
        if num_tensorcores >= 2 and BH >= 2 and BH // g < 2:
            continue
        if _block_bytes(g, Sq, Sk, D, E, itemsize) > vmem_budget_bytes:
            continue
        best = max(best, g)
    return best


# ---------------------------------------------------------------------------
# Public wrapper
# ---------------------------------------------------------------------------
def sdpa_pallas(query, key, value, scale_factor, dropout_p):
    B, H, Sq, D = query.shape
    Bk, Hk, Sk, Dk = key.shape
    Bv, Hv, Skv, E = value.shape
    assert (B, H) == (Bk, Hk) == (Bv, Hv) and D == Dk and Sk == Skv

    dtype = query.dtype

    if dropout_p >= 1.0:
        # dropout(p=1) zeroes the attention weights deterministically; the
        # output is exactly zero -- no kernel launch / HBM pass needed.
        return jnp.zeros((B, H, Sq, E), dtype=dtype)

    if dropout_p != 0.0:
        # TODO(synk): stochastic dropout for 0 < p < 1 (pltpu.prng_seed /
        # prng_random_bits + 1/(1-p) rescale) is not implemented; the original
        # module only exercises the degenerate p in {0, 1} cases.
        raise NotImplementedError("sdpa_pallas supports dropout_p in {0, 1} only")

    BH = B * H
    itemsize = jnp.dtype(dtype).itemsize

    vmem_bytes, num_tc = _tpu_info()
    # ~45% of physical VMEM for the working set (~57 MiB on v5e/v6e, ~28 MiB
    # on v7x); the rest is compiler scratch / pipelining headroom.
    vmem_budget = int(0.45 * vmem_bytes)

    G = _choose_group(BH, Sq, Sk, D, E, itemsize, vmem_budget, num_tc)
    grid = (BH // G,)

    # Matmul operand dtype: keep narrow inputs as-is, downcast f32 to bf16
    # (f32 operands are multi-pass on the MXU); accumulation stays f32.
    mm_dtype = jnp.bfloat16 if dtype == jnp.float32 else dtype

    # Lane-dense K: when Sk >= 128, pre-transpose once in XLA so the K tile's
    # last dim is >= 128 (full DMA bursts / full vregs) instead of D.
    k_transposed = Sk >= 128

    q2 = query.reshape(BH, Sq, D)
    if k_transposed:
        k2 = jnp.swapaxes(key.reshape(BH, Sk, D), 1, 2)  # (BH, D, Sk)
        k_block = (G, D, Sk)
    else:
        k2 = key.reshape(BH, Sk, D)
        k_block = (G, Sk, D)
    v2 = value.reshape(BH, Sk, E)

    # Explicit VMEM limit from the chosen blocks + 25% headroom; no artificial
    # floor, capped below physical capacity so Mosaic keeps scratch headroom.
    need = _block_bytes(G, Sq, Sk, D, E, itemsize)
    cap = min(48 * 1024 * 1024, (vmem_bytes * 3) // 4)
    vmem_limit = int(min(cap, max(4 * 1024 * 1024, int(need * 1.25))))

    compiler_params = pltpu.CompilerParams(
        dimension_semantics=("parallel",),
        vmem_limit_bytes=vmem_limit,
    )

    kernel = functools.partial(
        _sdpa_kernel,
        scale=float(scale_factor),
        k_transposed=k_transposed,
        mm_dtype=mm_dtype,
    )

    out = pl.pallas_call(
        kernel,
        out_shape=jax.ShapeDtypeStruct((BH, Sq, E), dtype),
        grid=grid,
        in_specs=[
            pl.BlockSpec((G, Sq, D), lambda i: (i, 0, 0)),
            pl.BlockSpec(k_block, lambda i: (i, 0, 0)),
            pl.BlockSpec((G, Sk, E), lambda i: (i, 0, 0)),
        ],
        out_specs=pl.BlockSpec((G, Sq, E), lambda i: (i, 0, 0)),
        compiler_params=compiler_params,
    )(q2, k2, v2)

    # TODO(synk): for Sq*Sk blocks that exceed the generation-aware VMEM budget
    # even at G=1 (long sequences, hit ~2x earlier on v7x's 64 MiB VMEM), add
    # flash-style Sk tiling (online softmax over an 'arbitrary' Sk grid axis).
    return out.reshape(B, H, Sq, E)


# ---------------------------------------------------------------------------
# Pure-JAX reference
# ---------------------------------------------------------------------------
def sdpa_reference(query, key, value, scale_factor, dropout_p):
    qf = query.astype(jnp.float32)
    kf = key.astype(jnp.float32)
    vf = value.astype(jnp.float32)
    s = jnp.einsum("bhqd,bhkd->bhqk", qf, kf) * scale_factor
    p = jax.nn.softmax(s, axis=-1)
    if dropout_p >= 1.0:
        p = jnp.zeros_like(p)
    return jnp.einsum("bhqk,bhke->bhqe", p, vf)


if __name__ == "__main__":
    # Small attention-style shapes (the original module's literal shapes are
    # inconsistent for a matmul, so we use a coherent attention layout).
    B, H, Sq, Sk, D, E = 2, 3, 8, 16, 32, 128
    k0 = jax.random.PRNGKey(0)
    kq, kk, kv = jax.random.split(k0, 3)
    query = jax.random.normal(kq, (B, H, Sq, D), dtype=jnp.float32)
    key = jax.random.normal(kk, (B, H, Sk, D), dtype=jnp.float32)
    value = jax.random.normal(kv, (B, H, Sk, E), dtype=jnp.float32)

    # 1) The original module's configuration: scale=1, dropout_p=1 -> zeros.
    out = jax.block_until_ready(sdpa_pallas(query, key, value, 1.0, 1.0))
    ref = sdpa_reference(query, key, value, 1.0, 1.0)
    assert out.shape == (B, H, Sq, E)
    assert jnp.allclose(out, ref, atol=1e-6, rtol=1e-6)

    # 2) Non-degenerate path (dropout off), non-trivial scale, f32 inputs.
    #    Matmul operands run in bf16 (f32 accumulation), hence 2e-2 tolerance.
    out2 = jax.block_until_ready(sdpa_pallas(query, key, value, 0.125, 0.0))
    ref2 = sdpa_reference(query, key, value, 0.125, 0.0)
    assert jnp.allclose(out2, ref2, atol=2e-2, rtol=2e-2)

    # 3) bf16 inputs stay bf16 on the MXU (f32 accumulation only).
    qb = query.astype(jnp.bfloat16)
    kb = key.astype(jnp.bfloat16)
    vb = value.astype(jnp.bfloat16)
    out3 = jax.block_until_ready(sdpa_pallas(qb, kb, vb, 0.125, 0.0))
    ref3 = sdpa_reference(qb, kb, vb, 0.125, 0.0)
    assert out3.dtype == jnp.bfloat16
    assert jnp.allclose(out3.astype(jnp.float32), ref3, atol=5e-2, rtol=5e-2)

    # 4) Lane-dense K path (Sk >= 128 -> pre-transposed K tile).
    B4, H4, Sq4, Sk4, D4, E4 = 1, 2, 8, 128, 32, 64
    kq4, kk4, kv4 = jax.random.split(jax.random.PRNGKey(1), 3)
    q4 = jax.random.normal(kq4, (B4, H4, Sq4, D4), dtype=jnp.float32)
    k4 = jax.random.normal(kk4, (B4, H4, Sk4, D4), dtype=jnp.float32)
    v4 = jax.random.normal(kv4, (B4, H4, Sk4, E4), dtype=jnp.float32)
    out4 = jax.block_until_ready(sdpa_pallas(q4, k4, v4, 0.125, 0.0))
    ref4 = sdpa_reference(q4, k4, v4, 0.125, 0.0)
    assert jnp.allclose(out4, ref4, atol=2e-2, rtol=2e-2)

    print("KERNEL_OK")
</pallas_src>

<mosaic_0001>
module attributes {stable_mosaic.version = 11 : i64} {
  func.func @_sdpa_kernel(%arg0: i32, %arg1: memref<6x8x32xf32, #tpu.memory_space<vmem>>, %arg2: memref<6x16x32xf32, #tpu.memory_space<vmem>>, %arg3: memref<6x16x128xf32, #tpu.memory_space<vmem>>, %arg4: memref<6x8x128xf32, #tpu.memory_space<vmem>>) attributes {dimension_semantics = [#tpu.dimension_semantics<parallel>], iteration_bounds = array<i64: 1>, scalar_prefetch = 0 : i64, scratch_operands = 0 : i64, tpu.core_type = #tpu.core_type<tc>, window_params = [{transform_indices = @transform_0, window_bounds = array<i64: 6, 8, 32>}, {transform_indices = @transform_1, window_bounds = array<i64: 6, 16, 32>}, {transform_indices = @transform_2, window_bounds = array<i64: 6, 16, 128>}, {transform_indices = @transform_3, window_bounds = array<i64: 6, 8, 128>}]} {
    %c0 = arith.constant 0 : index
    %c0_0 = arith.constant 0 : index
    %c0_1 = arith.constant 0 : index
    %0 = vector.load %arg1[%c0, %c0_0, %c0_1] : memref<6x8x32xf32, #tpu.memory_space<vmem>>, vector<6x8x32xf32>
    %cst = arith.constant 1.250000e-01 : f32
    %1 = vector.broadcast %cst : f32 to vector<6x8x32xf32>
    %2 = arith.mulf %0, %1 : vector<6x8x32xf32>
    %3 = arith.truncf %2 : vector<6x8x32xf32> to vector<6x8x32xbf16>
    %c0_2 = arith.constant 0 : index
    %c0_3 = arith.constant 0 : index
    %c0_4 = arith.constant 0 : index
    %4 = vector.load %arg2[%c0_2, %c0_3, %c0_4] : memref<6x16x32xf32, #tpu.memory_space<vmem>>, vector<6x16x32xf32>
    %5 = arith.truncf %4 : vector<6x16x32xf32> to vector<6x16x32xbf16>
    %cst_5 = arith.constant dense<0.000000e+00> : vector<6x8x16xf32>
    %6 = tpu.matmul %3, %5, %cst_5 {dimension_numbers = #tpu.dot_dimension_numbers<[2], [2], [1], [1], [0, 0, 0, 1, 1, 1], [0], [0]>} : vector<6x8x32xbf16>, vector<6x16x32xbf16>, vector<6x8x16xf32> -> vector<6x8x16xf32>
    %cst_6 = arith.constant dense<0xFF800000> : vector<6x8xf32>
    %7 = vector.multi_reduction <maximumf>, %6, %cst_6 [2] : vector<6x8x16xf32> to vector<6x8xf32>
    %8 = vector.shape_cast %7 : vector<6x8xf32> to vector<6x8x1xf32>
    %9 = vector.broadcast %8 : vector<6x8x1xf32> to vector<6x8x16xf32>
    %10 = arith.subf %6, %9 : vector<6x8x16xf32>
    %11 = math.exp %10 : vector<6x8x16xf32>
    %cst_7 = arith.constant dense<0.000000e+00> : vector<6x8xf32>
    %12 = vector.multi_reduction <add>, %11, %cst_7 [2] : vector<6x8x16xf32> to vector<6x8xf32>
    %13 = vector.shape_cast %12 : vector<6x8xf32> to vector<6x8x1xf32>
    %14 = arith.truncf %11 : vector<6x8x16xf32> to vector<6x8x16xbf16>
    %c0_8 = arith.constant 0 : index
    %c0_9 = arith.constant 0 : index
    %c0_10 = arith.constant 0 : index
    %15 = vector.load %arg3[%c0_8, %c0_9, %c0_10] : memref<6x16x128xf32, #tpu.memory_space<vmem>>, vector<6x16x128xf32>
    %16 = arith.truncf %15 : vector<6x16x128xf32> to vector<6x16x128xbf16>
    %cst_11 = arith.constant dense<0.000000e+00> : vector<6x8x128xf32>
    %17 = tpu.matmul %14, %16, %cst_11 {dimension_numbers = #tpu.dot_dimension_numbers<[2], [1], [1], [2], [0, 0, 0, 1, 1, 2], [0], [0]>} : vector<6x8x16xbf16>, vector<6x16x128xbf16>, vector<6x8x128xf32> -> vector<6x8x128xf32>
    %18 = tpu.reciprocal %13 {approx = true} : vector<6x8x1xf32> -> vector<6x8x1xf32>
    %19 = vector.broadcast %18 : vector<6x8x1xf32> to vector<6x8x128xf32>
    %20 = arith.mulf %17, %19 : vector<6x8x128xf32>
    %c0_12 = arith.constant 0 : index
    %c0_13 = arith.constant 0 : index
    %c0_14 = arith.constant 0 : index
    %21 = vector.load %arg4[%c0_12, %c0_13, %c0_14] : memref<6x8x128xf32, #tpu.memory_space<vmem>>, vector<6x8x128xf32>
    tpu.vector_store %arg4[%c0_12, %c0_13, %c0_14], %20 {strides = array<i32>} : memref<6x8x128xf32, #tpu.memory_space<vmem>>, vector<6x8x128xf32>,
    return
  }
  func.func @transform_0(%arg0: i32) -> (i32, i32, i32) {
    %c0_i32 = arith.constant 0 : i32
    %c0_i32_0 = arith.constant 0 : i32
    %c0_i32_1 = arith.constant 0 : i32
    return %arg0, %c0_i32, %c0_i32_0 : i32, i32, i32
  }
  func.func @transform_1(%arg0: i32) -> (i32, i32, i32) {
    %c0_i32 = arith.constant 0 : i32
    %c0_i32_0 = arith.constant 0 : i32
    %c0_i32_1 = arith.constant 0 : i32
    return %arg0, %c0_i32, %c0_i32_0 : i32, i32, i32
  }
  func.func @transform_2(%arg0: i32) -> (i32, i32, i32) {
    %c0_i32 = arith.constant 0 : i32
    %c0_i32_0 = arith.constant 0 : i32
    %c0_i32_1 = arith.constant 0 : i32
    return %arg0, %c0_i32, %c0_i32_0 : i32, i32, i32
  }
  func.func @transform_3(%arg0: i32) -> (i32, i32, i32) {
    %c0_i32 = arith.constant 0 : i32
    %c0_i32_0 = arith.constant 0 : i32
    %c0_i32_1 = arith.constant 0 : i32
    return %arg0, %c0_i32, %c0_i32_0 : i32, i32, i32
  }
}

</mosaic_0001>

<bundles_post_ra>
// kernel: tpu_custom_call.1
= control target key start
LH: loop header
LB: loop body
LE: loop exit
PB: predicated region body
PF: predicated region fallthrough
CT: control target
= control target key end

     0   :  { %8 = vsyncpa [#allocation3], 0  ;;  %s1138_s0 = inlined_call_operand.hbm [shape: f32[6,8,32], index: 0, kind: input, shape index: {}]   ;;  %s1139_s1 = inlined_call_operand.hbm [shape: f32[6,16,32], index: 1, kind: input, shape index: {}]   ;;  %s1140_s2 = inlined_call_operand.hbm [shape: f32[6,16,128], index: 2, kind: input, shape index: {}]   ;;  %s1141_s3 = inlined_call_operand.hbm [shape: f32[6,8,128], index: 3, kind: output, shape index: {}]  }
   0x1   :  { %9 = vsyncpa [#allocation6], 0 }
   0x2   :  { %10 = vsyncpa [#allocation4], 0  ;;  %s977_s12 = smov [#allocation5]   ;;  %s978_s14 = smov [#allocation2]  }
   0x3   :  { %s28_s13 = sshll.u32 %s977_s12, 4  ;;  %s16_s15 = sshll.u32 %s978_s14, 4  ;;  %s29_s13 = int_to_ptr.vmem [resolvable:$true] %s28_s13  ;;  %s1005_s15 = int_to_ptr.vmem [resolvable:$true] %s16_s15 }
   0x4   :  { %s883_s18 = scalar_lea.hbm %s1139_s1, 1536 }
   0x5   :  { %p884_p0 = scmp.ne.s32.totalorder %s1139_s1, %s883_s18  ;;  %p887_p1 = scmp.lt.u32.totalorder %s883_s18, %s1139_s1 }
   0x7   :  { %p889_p2 = pnand %p887_p1, %p884_p0 }
   0x9   :  { %892 = shalt.err (!%p889_p2)
}
   0xa   :  { %s893_s23 = scalar_lea.vmem %s29_s13, 1536  ;;  %p898_p4 = scmp.lt.s32.totalorder %s29_s13, %s29_s13 }
   0xb   :  { %p894_p3 = scmp.ne.s32.totalorder %s29_s13, %s893_s23  ;;  %p899_p5 = scmp.lt.s32.totalorder %s893_s23, %s893_s23 }
   0xd   :  { %p900_p6 = por %p899_p5, %p898_p4 }
   0xf   :  { %p901_p7 = pnand %p900_p6, %p894_p3 }
  0x11   :  { %904 = shalt.err (!%p901_p7)
}
  0x12   :  { %s979_s24 = smov 128   ;;  %s980_s25 = smov 8  }
  0x13   :  { %34 = dma.hbm_to_vmem [thread:$0]  %s1139_s1, 1536, %s29_s13, [#allocation6], %s979_s24, %s979_s24, %s980_s25  }
  0x14   :  { %s905_s30 = scalar_lea.hbm %s1138_s0, 768 }
  0x15   :  { %p906_p8 = scmp.ne.s32.totalorder %s1138_s0, %s905_s30  ;;  %p909_p9 = scmp.lt.u32.totalorder %s905_s30, %s1138_s0 }
  0x17   :  { %p911_p10 = pnand %p909_p9, %p906_p8 }
  0x19   :  { %914 = shalt.err (!%p911_p10)
}
  0x1a   :  { %s915_s8 = scalar_lea.vmem %s1005_s15, 768  ;;  %p920_p12 = scmp.lt.s32.totalorder %s1005_s15, %s1005_s15 }
  0x1b   :  { %p916_p11 = scmp.ne.s32.totalorder %s1005_s15, %s915_s8  ;;  %p921_p13 = scmp.lt.s32.totalorder %s915_s8, %s915_s8 }
  0x1d   :  { %p922_p0 = por %p921_p13, %p920_p12 }
  0x1f   :  { %p923_p1 = pnand %p922_p0, %p916_p11 }
  0x21   :  { %926 = shalt.err (!%p923_p1)
}
  0x22   :  { %22 = dma.hbm_to_vmem [thread:$0]  %s1138_s0, 768, %s1005_s15, [#allocation3], %s979_s24, %s979_s24, %s980_s25  }
  0x23   :  { %s981_s10 = smov [#allocation7]   ;;  %s927_s14 = scalar_lea.hbm %s1140_s2, 1536 }
  0x24   :  { %s40_s11 = sshll.u32 %s981_s10, 4  ;;  %p928_p2 = scmp.ne.s32.totalorder %s1140_s2, %s927_s14  ;;  %s41_s11 = int_to_ptr.vmem [resolvable:$true] %s40_s11 }
  0x25   :  { %p931_p3 = scmp.lt.u32.totalorder %s927_s14, %s1140_s2 }
  0x27   :  { %p933_p4 = pnand %p931_p3, %p928_p2 }
  0x29   :  { %936 = shalt.err (!%p933_p4)
}
  0x2a   :  { %s937_s20 = scalar_lea.vmem %s41_s11, 1536  ;;  %p942_p6 = scmp.lt.s32.totalorder %s41_s11, %s41_s11 }
  0x2b   :  { %p938_p5 = scmp.ne.s32.totalorder %s41_s11, %s937_s20  ;;  %p943_p7 = scmp.lt.s32.totalorder %s937_s20, %s937_s20 }
  0x2d   :  { %p944_p8 = por %p943_p7, %p942_p6 }
  0x2f   :  { %p945_p9 = pnand %p944_p8, %p938_p5 }
  0x31   :  { %948 = shalt.err (!%p945_p9)
}
  0x32   :  { %46 = dma.hbm_to_vmem [thread:$0]  %s1140_s2, 1536, %s41_s11, [#allocation6], %s979_s24, %s979_s24, %s980_s25  }
  0x33   :  { %971 = dma.done.wait [#allocation3], 768  }
  0x34   :  { %972 = vsyncadd [#allocation3], 4294966528 }
  0x35   :  { %973 = dma.done.wait [#allocation6], 3072  }
  0x36   :  { %974 = vsyncadd [#allocation6], 4294964224  ;;  %v982_v0 = vmov 0.0   ;;  %vm983_vm0 = vmmov 0   ;;  %v75_v1 = vld [vmem:[#allocation5] sm:$0xff]  ;;  %v76_v2 = vld [vmem:[#allocation5 + $0x8] sm:$0xff] }
  0x37   :  { %779 = vmatprep.subr.bf16.mxu0 %v982_v0  ;;  %785 = vmatprep.subr.bf16.mxu1 %v982_v0  ;;  %vm93_vm1 = vcmask 261120   ;;  %v77_v3 = vld [vmem:[#allocation5 + $0x10] sm:$0xff]  ;;  %v87_v4 = vpack.c.bf16 %v76_v2, %v75_v1  ;;  %v78_v5 = vld [vmem:[#allocation5 + $0x18] sm:$0xff]  ;;  %v79_v9 = vld [vmem:[#allocation5 + $0x20] sm:$0xff]  ;;  %vm370_vm2 = vcmask 130048   ;;  %s984_s2 = smov [#allocation8]  }
  0x38   :  { %781 = vmatprep.mubr.msk.bf16.mxu0 %vm983_vm0, %v982_v0  ;;  %787 = vmatprep.mubr.msk.bf16.mxu1 %vm983_vm0, %v982_v0  ;;  %v57_v6 = vld [vmem:[#allocation2] sm:$0xff]  ;;  %v58_v7 = vld [vmem:[#allocation2 + $0x8] sm:$0xff]  ;;  %v88_v8 = vpack.c.bf16 %v78_v5, %v77_v3  ;;  %v80_v10 = vld [vmem:[#allocation5 + $0x28] sm:$0xff]  ;;  %s730_s21 = sshll.u32 %s984_s2, 4  ;;  %s731_s21 = int_to_ptr.vmem [resolvable:$true] %s730_s21 }
  0x39   :  { %v98_v11 = vsel %vm93_vm1, %v87_v4, 0  ;;  %v63_v12 = vmul.f32 0.125, %v57_v6  ;;  %v81_v13 = vld [vmem:[#allocation5 + $0x30] sm:$0xff]  ;;  %v82_v14 = vld [vmem:[#allocation5 + $0x38] sm:$0xff]  ;;  %v64_v16 = vmul.f32 0.125, %v58_v7  ;;  %v89_v17 = vpack.c.bf16 %v80_v10, %v79_v9  ;;  %v59_v21 = vld [vmem:[#allocation2 + $0x10] sm:$0xff]  ;;  %p954_p11 = scmp.lt.s32.totalorder %s731_s21, %s731_s21 }
  0x3a   :  { %780 = vmatpush3.bf16.xpose.msra.mxu0 %v98_v11  ;;  %v144_v15 = vsel %vm93_vm1, %v88_v8, 0  ;;  %v90_v18 = vpack.c.bf16 %v82_v14, %v81_v13  ;;  %v60_v23 = vld [vmem:[#allocation2 + $0x18] sm:$0xff]  ;;  %v83_v25 = vld [vmem:[#allocation5 + $0x40] sm:$0xff]  ;;  %v65_v27 = vmul.f32 0.125, %v59_v21  ;;  %v85_v28 = vld [vmem:[#allocation5 + $0x50] sm:$0xff]  ;;  %s949_s22 = scalar_lea.vmem %s731_s21, 768 }
  0x3b   :  { %786 = vmatpush3.bf16.xpose.msra.mxu1 %v144_v15  ;;  %791 = vmatprep.subr.bf16.mxu0 %v982_v0  ;;  %v69_v19 = vpack.c.bf16 %v63_v12, %v63_v12  ;;  %v70_v20 = vpack.c.bf16 %v64_v16, %v64_v16  ;;  %v190_v22 = vsel %vm93_vm1, %v89_v17, 0  ;;  %v84_v26 = vld [vmem:[#allocation5 + $0x48] sm:$0xff]  ;;  %v86_v29 = vld [vmem:[#allocation5 + $0x58] sm:$0xff]  ;;  %v66_v30 = vmul.f32 0.125, %v60_v23  ;;  %v61_v35 = vld [vmem:[#allocation2 + $0x20] sm:$0xff]  ;;  %p950_p10 = scmp.ne.s32.totalorder %s731_s21, %s949_s22  ;;  %p955_p12 = scmp.lt.s32.totalorder %s949_s22, %s949_s22 }
  0x3c   :  { %797 = vmatprep.subr.bf16.mxu1 %v982_v0  ;;  %v236_v24 = vsel %vm93_vm1, %v90_v18, 0  ;;  %v91_v31 = vpack.c.bf16 %v84_v26, %v83_v25  ;;  %v92_v32 = vpack.c.bf16 %v86_v29, %v85_v28  ;;  %v71_v33 = vpack.c.bf16 %v65_v27, %v65_v27  ;;  %v62_v37 = vld [vmem:[#allocation2 + $0x28] sm:$0xff]  ;;  %v431_v10 = vld [vmem:[#allocation7] sm:$0xff]  ;;  %v432_v11 = vld [vmem:[#allocation7 + $0x8] sm:$0xff] }
  0x3d   :  { %v72_v34 = vpack.c.bf16 %v66_v30, %v66_v30  ;;  %v67_v39 = vmul.f32 0.125, %v61_v35  ;;  %v68_v40 = vmul.f32 0.125, %v62_v37  ;;  %v443_v12 = vpack.c.bf16 %v432_v11, %v431_v10  ;;  %v433_v13 = vld [vmem:[#allocation7 + $0x10] sm:$0xff]  ;;  %v434_v14 = vld [vmem:[#allocation7 + $0x18] sm:$0xff]  ;;  %v435_v26 = vld [vmem:[#allocation7 + $0x20] sm:$0xff]  ;;  %p956_p13 = por %p955_p12, %p954_p11 }
  0x3e   :  { %v282_v36 = vsel %vm93_vm1, %v91_v31, 0  ;;  %v328_v38 = vsel %vm93_vm1, %v92_v32, 0  ;;  %v444_v15 = vpack.c.bf16 %v434_v14, %v433_v13  ;;  %v436_v27 = vld [vmem:[#allocation7 + $0x28] sm:$0xff]  ;;  %v437_v35 = vld [vmem:[#allocation7 + $0x30] sm:$0xff] }
  0x3f   :  { %v73_v41 = vpack.c.bf16 %v67_v39, %v67_v39  ;;  %v74_v42 = vpack.c.bf16 %v68_v40, %v68_v40  ;;  %v445_v31 = vpack.c.bf16 %v436_v27, %v435_v26  ;;  %p957_p0 = pnand %p956_p13, %p950_p10 }
  0x41   :  { %782 = vmatmul.mubr.msk.bf16.vlgmr.msra.gmra.mrb[0].mxu0 %vm93_vm1, %v69_v19 }
  0x42   :  { %788 = vmatmul.mubr.msk.bf16.vlgmr.msra.gmra.mrb[0].mxu1 %vm93_vm1, %v70_v20  ;;  %792 = vmatpush3.bf16.xpose.msra.mxu0 %v190_v22 }
  0x43   :  { %798 = vmatpush3.bf16.xpose.msra.mxu1 %v236_v24  ;;  %793 = vmatprep.mubr.msk.bf16.mxu0 %vm983_vm0, %v982_v0 }
  0x44   :  { %799 = vmatprep.mubr.msk.bf16.mxu1 %vm983_vm0, %v982_v0  ;;  %803 = vmatprep.subr.bf16.mxu0 %v982_v0 }
  0x45   :  { %809 = vmatprep.subr.bf16.mxu1 %v982_v0 }
  0x49   :  { %794 = vmatmul.mubr.msk.bf16.vlgmr.msra.gmra.mrb[4].mxu0 %vm93_vm1, %v71_v33 }
  0x4a   :  { %800 = vmatmul.mubr.msk.bf16.vlgmr.msra.gmra.mrb[4].mxu1 %vm93_vm1, %v72_v34  ;;  %804 = vmatpush3.bf16.xpose.msra.mxu0 %v282_v36  ;;  %v438_v36 = vld [vmem:[#allocation7 + $0x38] sm:$0xff] }
  0x4b   :  { %810 = vmatpush3.bf16.xpose.msra.mxu1 %v328_v38  ;;  %805 = vmatprep.mubr.msk.bf16.mxu0 %vm983_vm0, %v982_v0 }
  0x4c   :  { %811 = vmatprep.mubr.msk.bf16.mxu1 %vm983_vm0, %v982_v0  ;;  %815 = vmatprep.subr.bf16.mxu0 %v982_v0 }
  0x4d   :  { %821 = vmatprep.subr.bf16.mxu1 %v982_v0 }
  0x51   :  { %806 = vmatmul.mubr.msk.bf16.vlgmr.msra.gmra.mrb[8].mxu0 %vm93_vm1, %v73_v41 }
  0x52   :  { %812 = vmatmul.mubr.msk.bf16.vlgmr.msra.gmra.mrb[8].mxu1 %vm93_vm1, %v74_v42  ;;  %817 = vmatprep.mubr.msk.bf16.mxu0 %vm983_vm0, %v982_v0  ;;  %v446_v42 = vpack.c.bf16 %v438_v36, %v437_v35 }
  0x53   :  { %823 = vmatprep.mubr.msk.bf16.mxu1 %vm983_vm0, %v982_v0  ;;  %816 = vmatpush3.bf16.msra.mxu0 %v443_v12 }
  0x54   :  { %827 = vmatprep.subr.bf16.mxu0 %v982_v0  ;;  %822 = vmatpush3.bf16.msra.mxu1 %v444_v15 }
  0x55   :  { %833 = vmatprep.subr.bf16.mxu1 %v982_v0 }
 0x114   :  { %v134_v43 = vpop.f32.mrb[0].mxu0 }
 0x115   :  { %v783_v44 = vpop.f32.mrb[1].mxu0  ;;  %v180_v45 = vpop.f32.mrb[0].mxu1  ;;  %v371_v46 = vsel %vm370_vm2, %v134_v43, -inf }
 0x116   :  { %372 = vmax.xlane.f32.xlu0 %v371_v46  ;;  %v137_v47 = vpop.f32.mrb[2].mxu0  ;;  %v789_v48 = vpop.f32.mrb[1].mxu1  ;;  %v374_v51 = vsel %vm370_vm2, %v180_v45, -inf  ;;  %v439_v46 = vld [vmem:[#allocation7 + $0x40] sm:$0xff] }
 0x117   :  { %v784_v49 = vpop.f32.mrb[3].mxu0  ;;  %v183_v50 = vpop.f32.mrb[2].mxu1  ;;  %v440_v47 = vld [vmem:[#allocation7 + $0x48] sm:$0xff] }
 0x118   :  { %v790_v52 = vpop.f32.mrb[3].mxu1  ;;  %v447_v49 = vpack.c.bf16 %v440_v47, %v439_v46 }
 0x119   :  { %v441_v52 = vld [vmem:[#allocation7 + $0x50] sm:$0xff] }
 0x11a   :  { %375 = vmax.xlane.f32.xlu0 %v374_v51 }
 0x11c   :  { %v226_v53 = vpop.f32.mrb[4].mxu0 }
 0x11d   :  { %v795_v54 = vpop.f32.mrb[5].mxu0  ;;  %v272_v55 = vpop.f32.mrb[4].mxu1  ;;  %v377_v56 = vsel %vm370_vm2, %v226_v53, -inf }
 0x11e   :  { %378 = vmax.xlane.f32.xlu1 %v377_v56  ;;  %v229_v57 = vpop.f32.mrb[6].mxu0  ;;  %v801_v58 = vpop.f32.mrb[5].mxu1  ;;  %v380_v61 = vsel %vm370_vm2, %v272_v55, -inf }
 0x11f   :  { %v796_v59 = vpop.f32.mrb[7].mxu0  ;;  %v275_v60 = vpop.f32.mrb[6].mxu1 }
 0x120   :  { %v802_v62 = vpop.f32.mrb[7].mxu1 }
 0x122   :  { %381 = vmax.xlane.f32.xlu1 %v380_v61 }
 0x124   :  { %v318_v63 = vpop.f32.mrb[8].mxu0 }
 0x125   :  { %v364_v1 = vpop.f32.mrb[8].mxu1  ;;  %v383_v2 = vsel %vm370_vm2, %v318_v63, -inf  ;;  %v807_v3 = vpop.f32.mrb[9].mxu0 }
 0x126   :  { %v386_v4 = vsel %vm370_vm2, %v364_v1, -inf  ;;  %384 = vmax.xlane.f32.xlu0 %v383_v2  ;;  %v813_v5 = vpop.f32.mrb[9].mxu1  ;;  %v321_v6 = vpop.f32.mrb[10].mxu0 }
 0x127   :  { %387 = vmax.xlane.f32.xlu1 %v386_v4  ;;  %v367_v7 = vpop.f32.mrb[10].mxu1  ;;  %v808_v8 = vpop.f32.mrb[11].mxu0 }
 0x128   :  { %v814_v9 = vpop.f32.mrb[11].mxu1 }
 0x1a3   :  { %v373_v16 = vpop.xlane.xlu0 %372 }
 0x1a4   :  { %v389_v17 = vsub.f32 %v134_v43, %v373_v16 }
 0x1a6   :  { %v395_v18 = vmul.f32 1.442695, %v389_v17 }
 0x1a7   :  { %v376_v19 = vpop.xlane.xlu0 %375 }
 0x1a8   :  { %859 = vpow2.f32 %v395_v18  ;;  %v390_v20 = vsub.f32 %v180_v45, %v376_v19 }
 0x1aa   :  { %v397_v21 = vmul.f32 1.442695, %v390_v20 }
 0x1ab   :  { %v379_v22 = vpop.xlane.xlu1 %378 }
 0x1ac   :  { %861 = vpow2.f32 %v397_v21  ;;  %v391_v23 = vsub.f32 %v226_v53, %v379_v22  ;;  %v442_v53 = vld [vmem:[#allocation7 + $0x58] sm:$0xff] }
 0x1ae   :  { %v399_v24 = vmul.f32 1.442695, %v391_v23 }
 0x1af   :  { %v382_v25 = vpop.xlane.xlu1 %381 }
 0x1b0   :  { %863 = vpow2.f32 %v399_v24  ;;  %v392_v28 = vsub.f32 %v272_v55, %v382_v25  ;;  %v448_v55 = vpack.c.bf16 %v442_v53, %v441_v52 }
 0x1b2   :  { %v860_v29 = vpop.eup %859  ;;  %v401_v30 = vmul.f32 1.442695, %v392_v28 }
 0x1b3   :  { %v385_v32 = vpop.xlane.xlu0 %384  ;;  %v407_v33 = vsel %vm370_vm2, %v860_v29, 0.0  ;;  %v425_v34 = vpack.c.bf16 %v860_v29, %v860_v29 }
 0x1b4   :  { %865 = vpow2.f32 %v401_v30  ;;  %v388_v37 = vpop.xlane.xlu1 %387  ;;  %v393_v38 = vsub.f32 %v318_v63, %v385_v32  ;;  %408 = vadd.xlane.f32.xlu0 %v407_v33 }
 0x1b5   :  { %v394_v39 = vsub.f32 %v364_v1, %v388_v37  ;;  %818 = vmatmul.mubr.msk.bf16.vlgmr.msra.gmra.mrb[12].mxu0 %vm370_vm2, %v425_v34 }
 0x1b6   :  { %v862_v40 = vpop.eup %861  ;;  %v403_v41 = vmul.f32 1.442695, %v393_v38  ;;  %828 = vmatpush3.bf16.msra.mxu0 %v445_v31  ;;  %829 = vmatprep.mubr.msk.bf16.mxu0 %vm983_vm0, %v982_v0 }
 0x1b7   :  { %v405_v43 = vmul.f32 1.442695, %v394_v39  ;;  %v410_v44 = vsel %vm370_vm2, %v862_v40, 0.0  ;;  %v426_v45 = vpack.c.bf16 %v862_v40, %v862_v40  ;;  %839 = vmatprep.subr.bf16.mxu0 %v982_v0 }
 0x1b8   :  { %867 = vpow2.f32 %v403_v41  ;;  %411 = vadd.xlane.f32.xlu1 %v410_v44 }
 0x1b9   :  { %869 = vpow2.f32 %v405_v43  ;;  %824 = vmatmul.mubr.msk.bf16.vlgmr.msra.gmra.mrb[12].mxu1 %vm370_vm2, %v426_v45 }
 0x1ba   :  { %v864_v48 = vpop.eup %863  ;;  %834 = vmatpush3.bf16.msra.mxu1 %v446_v42  ;;  %835 = vmatprep.mubr.msk.bf16.mxu1 %vm983_vm0, %v982_v0 }
 0x1bb   :  { %v413_v50 = vsel %vm370_vm2, %v864_v48, 0.0  ;;  %v427_v51 = vpack.c.bf16 %v864_v48, %v864_v48  ;;  %845 = vmatprep.subr.bf16.mxu1 %v982_v0 }
 0x1bc   :  { %414 = vadd.xlane.f32.xlu0 %v413_v50 }
 0x1bd   :  { %830 = vmatmul.mubr.msk.bf16.vlgmr.msra.gmra.mrb[16].mxu0 %vm370_vm2, %v427_v51 }
 0x1be   :  { %v866_v54 = vpop.eup %865  ;;  %840 = vmatpush3.bf16.msra.mxu0 %v447_v49  ;;  %841 = vmatprep.mubr.msk.bf16.mxu0 %vm983_vm0, %v982_v0 }
 0x1bf   :  { %v416_v56 = vsel %vm370_vm2, %v866_v54, 0.0  ;;  %v428_v57 = vpack.c.bf16 %v866_v54, %v866_v54 }
 0x1c0   :  { %417 = vadd.xlane.f32.xlu1 %v416_v56 }
 0x1c1   :  { %836 = vmatmul.mubr.msk.bf16.vlgmr.msra.gmra.mrb[16].mxu1 %vm370_vm2, %v428_v57 }
 0x1c2   :  { %v868_v58 = vpop.eup %867  ;;  %846 = vmatpush3.bf16.msra.mxu1 %v448_v55  ;;  %847 = vmatprep.mubr.msk.bf16.mxu1 %vm983_vm0, %v982_v0 }
 0x1c3   :  { %v870_v59 = vpop.eup %869  ;;  %v419_v60 = vsel %vm370_vm2, %v868_v58, 0.0  ;;  %v429_v61 = vpack.c.bf16 %v868_v58, %v868_v58 }
 0x1c4   :  { %v422_v62 = vsel %vm370_vm2, %v870_v59, 0.0  ;;  %420 = vadd.xlane.f32.xlu0 %v419_v60  ;;  %v430_v63 = vpack.c.bf16 %v870_v59, %v870_v59 }
 0x1c5   :  { %423 = vadd.xlane.f32.xlu1 %v422_v62  ;;  %842 = vmatmul.mubr.msk.bf16.vlgmr.msra.gmra.mrb[20].mxu0 %vm370_vm2, %v429_v61 }
 0x1c9   :  { %848 = vmatmul.mubr.msk.bf16.vlgmr.msra.gmra.mrb[20].mxu1 %vm370_vm2, %v430_v63 }
 0x241   :  { %v409_v1 = vpop.xlane.xlu0 %408 }
 0x242   :  { %871 = vrcp.f32 %v409_v1 }
 0x245   :  { %v412_v2 = vpop.xlane.xlu1 %411 }
 0x246   :  { %873 = vrcp.f32 %v412_v2 }
 0x249   :  { %v415_v3 = vpop.xlane.xlu0 %414 }
 0x24a   :  { %875 = vrcp.f32 %v415_v3 }
 0x24c   :  { %v872_v4 = vpop.eup %871 }
 0x24d   :  { %v418_v0 = vpop.xlane.xlu1 %417 }
 0x24e   :  { %877 = vrcp.f32 %v418_v0 }
 0x250   :  { %v874_v11 = vpop.eup %873 }
 0x251   :  { %v421_v9 = vpop.xlane.xlu0 %420 }
 0x252   :  { %879 = vrcp.f32 %v421_v9  ;;  %v424_v16 = vpop.xlane.xlu1 %423 }
 0x253   :  { %881 = vrcp.f32 %v424_v16 }
 0x254   :  { %v876_v18 = vpop.eup %875 }
 0x258   :  { %v878_v24 = vpop.eup %877 }
 0x25c   :  { %v880_v30 = vpop.eup %879 }
 0x25d   :  { %v882_v36 = vpop.eup %881 }
 0x288   :  { %v486_v5 = vpop.f32.mrb[12].mxu0 }
 0x289   :  { %v713_v6 = vmul.f32 %v872_v4, %v486_v5  ;;  %v819_v7 = vpop.f32.mrb[13].mxu0 }
 0x28a   :  { %v489_v8 = vpop.f32.mrb[14].mxu0 }
 0x28b   :  { %719 = vst [vmem:[#allocation8] sm:$0xff] %v713_v6  ;;  %v820_v10 = vpop.f32.mrb[15].mxu0 }
 0x28c   :  { %v529_v12 = vpop.f32.mrb[12].mxu1 }
 0x28d   :  { %v714_v13 = vmul.f32 %v874_v11, %v529_v12  ;;  %v825_v14 = vpop.f32.mrb[13].mxu1 }
 0x28e   :  { %v532_v15 = vpop.f32.mrb[14].mxu1 }
 0x28f   :  { %720 = vst [vmem:[#allocation8 + $0x8] sm:$0xff] %v714_v13  ;;  %v826_v17 = vpop.f32.mrb[15].mxu1 }
 0x290   :  { %v572_v19 = vpop.f32.mrb[16].mxu0 }
 0x291   :  { %v715_v20 = vmul.f32 %v876_v18, %v572_v19  ;;  %v831_v21 = vpop.f32.mrb[17].mxu0 }
 0x292   :  { %v575_v22 = vpop.f32.mrb[18].mxu0 }
 0x293   :  { %721 = vst [vmem:[#allocation8 + $0x10] sm:$0xff] %v715_v20  ;;  %v832_v23 = vpop.f32.mrb[19].mxu0 }
 0x294   :  { %v615_v25 = vpop.f32.mrb[16].mxu1 }
 0x295   :  { %v716_v26 = vmul.f32 %v878_v24, %v615_v25  ;;  %v837_v27 = vpop.f32.mrb[17].mxu1 }
 0x296   :  { %v618_v28 = vpop.f32.mrb[18].mxu1 }
 0x297   :  { %722 = vst [vmem:[#allocation8 + $0x18] sm:$0xff] %v716_v26  ;;  %v838_v29 = vpop.f32.mrb[19].mxu1 }
 0x298   :  { %v658_v31 = vpop.f32.mrb[20].mxu0 }
 0x299   :  { %v717_v32 = vmul.f32 %v880_v30, %v658_v31  ;;  %v843_v33 = vpop.f32.mrb[21].mxu0 }
 0x29a   :  { %v661_v34 = vpop.f32.mrb[22].mxu0 }
 0x29b   :  { %723 = vst [vmem:[#allocation8 + $0x20] sm:$0xff] %v717_v32  ;;  %v844_v35 = vpop.f32.mrb[23].mxu0 }
 0x29c   :  { %v701_v37 = vpop.f32.mrb[20].mxu1 }
 0x29d   :  { %v718_v38 = vmul.f32 %v882_v36, %v701_v37  ;;  %v849_v39 = vpop.f32.mrb[21].mxu1 }
 0x29e   :  { %v704_v40 = vpop.f32.mrb[22].mxu1 }
 0x29f   :  { %724 = vst [vmem:[#allocation8 + $0x28] sm:$0xff] %v718_v38  ;;  %v850_v41 = vpop.f32.mrb[23].mxu1 }
 0x2a0   :  { %960 = shalt.err (!%p957_p0)
}
 0x2a1   :  { %s961_s27 = scalar_lea.hbm %s1141_s3, 768 }
 0x2a2   :  { %p962_p1 = scmp.ne.s32.totalorder %s1141_s3, %s961_s27  ;;  %p965_p2 = scmp.lt.u32.totalorder %s961_s27, %s1141_s3 }
 0x2a4   :  { %p967_p3 = pnand %p965_p2, %p962_p1 }
 0x2a6   :  { %970 = shalt.err (!%p967_p3)
}
 0x2a7   :  { %736 = dma.vmem_to_hbm [thread:$0]  %s731_s21, 768, %s1141_s3, [#allocation4], %s979_s24, %s979_s24, %s980_s25  }
 0x2a8   :  { %975 = dma.done.wait [#allocation4], 768  }
 0x2a9   :  { %976 = vsyncadd [#allocation4], 4294966528 }
 0x2aa   :  { %740 = vsyncpa [#allocation3], 1 }
 0x2ab   :  { %741 = vsyncpa [#allocation6], 1 }
 0x2ac   :  { %742 = vsyncpa [#allocation4], 1 }

</bundles_post_ra>
